<compile_context>
chip_gen: v7x
topology: tpu7x:2x2x1
jax: 0.10.0
libtpu: 0.0.40
codegen_flags: <defaults>
</compile_context>

<pallas_src>
import math
import functools

import jax
import jax.numpy as jnp
from jax.experimental import pallas as pl
from jax.experimental.pallas import tpu as pltpu

_EPS = 1e-7
_LANES = 128          # lane width (box index, fast axis)
_MAX_SUBLANES = 32    # sublane rows per grid step -> 32*128 = 4096 boxes/step


def _recip(x):
    """EUP approx reciprocal + one Newton-Raphson step (~f32 accurate)."""
    r = pl.reciprocal(x, approx=True)
    return r * (2.0 - x * r)


def _atan(x):
    """Cephes-style f32 arctan built from VPU ops + EUP reciprocal."""
    sign = jnp.where(x < 0.0, jnp.float32(-1.0), jnp.float32(1.0))
    ax = jnp.abs(x)
    big = ax > 2.414213562373095        # tan(3*pi/8)
    med = ax > 0.41421356237309503      # tan(pi/8)
    xr = jnp.where(big, -_recip(ax + 1e-30),
                   jnp.where(med, (ax - 1.0) * _recip(ax + 1.0), ax))
    y0 = jnp.where(big, jnp.float32(math.pi / 2),
                   jnp.where(med, jnp.float32(math.pi / 4), jnp.float32(0.0)))
    z = xr * xr
    poly = ((8.05374449538e-2 * z - 1.38776856032e-1) * z
            + 1.99777106478e-1) * z - 3.33329491539e-1
    return sign * (y0 + xr + xr * z * poly)


def _ciou_kernel(p_ref, t_ref, *out_refs, wh_to_xy):
    # (4, TR, 128) blocks; each coordinate slice is a dense (TR, 128) slab.
    p = p_ref[...].astype(jnp.float32)
    t = t_ref[...].astype(jnp.float32)

    if wh_to_xy:  # cxcywh -> xyxy (torchvision.ops.box_convert)
        pcx, pcy, pw, ph = p[0], p[1], p[2], p[3]
        px1, py1 = pcx - 0.5 * pw, pcy - 0.5 * ph
        px2, py2 = pcx + 0.5 * pw, pcy + 0.5 * ph
        tcx, tcy, tw, th = t[0], t[1], t[2], t[3]
        tx1, ty1 = tcx - 0.5 * tw, tcy - 0.5 * th
        tx2, ty2 = tcx + 0.5 * tw, tcy + 0.5 * th
    else:
        px1, py1, px2, py2 = p[0], p[1], p[2], p[3]
        tx1, ty1, tx2, ty2 = t[0], t[1], t[2], t[3]

    # intersection / union / IoU
    ix1 = jnp.maximum(px1, tx1)
    iy1 = jnp.maximum(py1, ty1)
    ix2 = jnp.minimum(px2, tx2)
    iy2 = jnp.minimum(py2, ty2)
    iw = jnp.maximum(ix2 - ix1, 0.0)
    ih = jnp.maximum(iy2 - iy1, 0.0)
    inters = iw * ih
    uni = ((px2 - px1) * (py2 - py1)
           + (tx2 - tx1) * (ty2 - ty1) - inters)
    iou = inters * _recip(uni + _EPS)

    # center-distance (DIoU) term
    cxp = (px2 + px1) * 0.5
    cyp = (py2 + py1) * 0.5
    cxt = (tx2 + tx1) * 0.5
    cyt = (ty2 + ty1) * 0.5
    inter_diag = (cxt - cxp) ** 2 + (cyt - cyp) ** 2
    ox1 = jnp.minimum(px1, tx1)
    oy1 = jnp.minimum(py1, ty1)
    ox2 = jnp.maximum(px2, tx2)
    oy2 = jnp.maximum(py2, ty2)
    outer_diag = (ox1 - ox2) ** 2 + (oy1 - oy2) ** 2
    d_iou = iou - inter_diag * _recip(outer_diag)

    # aspect-ratio consistency term, single arctan via
    # atan(a) - atan(b) = atan((a-b)/(1+a*b))  (a, b > 0 for valid boxes)
    w_t = tx2 - tx1 + 1.0
    h_t = ty2 - ty1 + 1.0
    w_p = px2 - px1 + 1.0
    h_p = py2 - py1 + 1.0
    diff = _atan((w_t * h_p - w_p * h_t) * _recip(h_t * h_p + w_t * w_p))
    v = diff * diff * (4.0 / (math.pi ** 2))
    alpha = v * _recip(1.0 - iou + v)

    c_iou = jnp.clip(d_iou - alpha * v, -1.0, 1.0)
    loss = 1.0 - c_iou

    out_refs[0][...] = loss.astype(out_refs[0].dtype)
    if len(out_refs) > 1:  # only pay the second writeback when requested
        out_refs[1][...] = c_iou.astype(out_refs[1].dtype)


def ciou_loss(predict, target, *, wh_to_xy=True, reduction="none",
              return_c_iou=False, interpret=False):
    """JAX/Pallas equivalent of CIouLoss.forward. predict/target: (..., 4)."""
    assert predict.shape == target.shape and predict.shape[-1] == 4
    lead_shape = predict.shape[:-1]

    p = predict.reshape(-1, 4)   # keep native dtype; cast happens in-kernel
    t = target.reshape(-1, 4)
    n = p.shape[0]

    # Adaptive sublane-dense tiling: TR*128 boxes per grid step.
    r_needed = max(1, -(-n // _LANES))
    tr = min(_MAX_SUBLANES, ((r_needed + 7) // 8) * 8)   # multiple of 8
    r_pad = -(-r_needed // tr) * tr
    npad = r_pad * _LANES
    pad = npad - n
    n_blocks = r_pad // tr

    def to_cm(x):
        # Fused pad + reshape + transpose (single XLA copy) to (4, R, 128).
        if pad:
            # 0.5 filler -> benign identical boxes in cxcywh; padded lanes are
            # sliced away before any reduction, so their values never matter.
            x = jnp.pad(x, ((0, pad), (0, 0)), constant_values=0.5)
        return x.reshape(r_pad, _LANES, 4).transpose(2, 0, 1)

    p_cm = to_cm(p)
    t_cm = to_cm(t)

    out_shapes = [jax.ShapeDtypeStruct((r_pad, _LANES), jnp.float32)]
    out_specs = [pl.BlockSpec((tr, _LANES), lambda i: (i, 0))]
    if return_c_iou:
        out_shapes.append(jax.ShapeDtypeStruct((r_pad, _LANES), jnp.float32))
        out_specs.append(pl.BlockSpec((tr, _LANES), lambda i: (i, 0)))

    kernel = functools.partial(_ciou_kernel, wh_to_xy=wh_to_xy)
    outs = pl.pallas_call(
        kernel,
        out_shape=tuple(out_shapes),
        grid=(n_blocks,),
        in_specs=[pl.BlockSpec((4, tr, _LANES), lambda i: (0, i, 0)),
                  pl.BlockSpec((4, tr, _LANES), lambda i: (0, i, 0))],
        out_specs=tuple(out_specs),
        compiler_params=pltpu.CompilerParams(
            dimension_semantics=("parallel",)),
        interpret=interpret,
    )(p_cm, t_cm)

    loss = outs[0].reshape(-1)[:n].reshape(lead_shape)
    if reduction == "mean":
        loss = jnp.mean(loss)
    elif reduction == "sum":
        loss = jnp.sum(loss)

    if return_c_iou:
        c_iou = outs[1].reshape(-1)[:n].reshape(lead_shape)
        return loss, c_iou
    return loss


def _ciou_loss_ref(predict, target, wh_to_xy=True):
    """Pure-JAX reference (mirrors the PyTorch code) for sanity checking."""
    p, t = predict.astype(jnp.float32), target.astype(jnp.float32)
    if wh_to_xy:
        p = jnp.concatenate([p[..., :2] - 0.5 * p[..., 2:],
                             p[..., :2] + 0.5 * p[..., 2:]], axis=-1)
        t = jnp.concatenate([t[..., :2] - 0.5 * t[..., 2:],
                             t[..., :2] + 0.5 * t[..., 2:]], axis=-1)
    ix1 = jnp.maximum(p[..., 0], t[..., 0]); iy1 = jnp.maximum(p[..., 1], t[..., 1])
    ix2 = jnp.minimum(p[..., 2], t[..., 2]); iy2 = jnp.minimum(p[..., 3], t[..., 3])
    iw = jnp.clip(ix2 - ix1, 0.0); ih = jnp.clip(iy2 - iy1, 0.0)
    inters = iw * ih
    uni = ((p[..., 2] - p[..., 0]) * (p[..., 3] - p[..., 1])
           + (t[..., 2] - t[..., 0]) * (t[..., 3] - t[..., 1]) - inters)
    iou = inters / (uni + _EPS)
    cxp = (p[..., 2] + p[..., 0]) / 2; cyp = (p[..., 3] + p[..., 1]) / 2
    cxt = (t[..., 2] + t[..., 0]) / 2; cyt = (t[..., 3] + t[..., 1]) / 2
    inter_diag = (cxt - cxp) ** 2 + (cyt - cyp) ** 2
    ox1 = jnp.minimum(p[..., 0], t[..., 0]); oy1 = jnp.minimum(p[..., 1], t[..., 1])
    ox2 = jnp.maximum(p[..., 2], t[..., 2]); oy2 = jnp.maximum(p[..., 3], t[..., 3])
    outer_diag = (ox1 - ox2) ** 2 + (oy1 - oy2) ** 2
    d_iou = iou - inter_diag / outer_diag
    w_t = t[..., 2] - t[..., 0] + 1.0; h_t = t[..., 3] - t[..., 1] + 1.0
    w_p = p[..., 2] - p[..., 0] + 1.0; h_p = p[..., 3] - p[..., 1] + 1.0
    v = (jnp.arctan(w_t / h_t) - jnp.arctan(w_p / h_p)) ** 2 * (4.0 / math.pi ** 2)
    alpha = v / (1.0 - iou + v)
    c_iou = jnp.clip(d_iou - alpha * v, -1.0, 1.0)
    return 1.0 - c_iou


if __name__ == "__main__":
    key = jax.random.PRNGKey(0)
    kp, kt = jax.random.split(key)
    n_boxes = 16
    # cxcywh boxes: centers in [0, 10], widths/heights in [1, 5]
    predict = jnp.concatenate(
        [jax.random.uniform(kp, (n_boxes, 2), minval=0.0, maxval=10.0),
         jax.random.uniform(kp, (n_boxes, 2), minval=1.0, maxval=5.0)], axis=-1)
    target = jnp.concatenate(
        [jax.random.uniform(kt, (n_boxes, 2), minval=0.0, maxval=10.0),
         jax.random.uniform(kt, (n_boxes, 2), minval=1.0, maxval=5.0)], axis=-1)

    ref = _ciou_loss_ref(predict, target, wh_to_xy=True)

    # single-output path (the common return_c_iou=False case)
    loss = ciou_loss(predict, target, wh_to_xy=True, reduction="none")
    loss = jax.block_until_ready(loss)
    assert loss.shape == (n_boxes,)
    assert bool(jnp.all(jnp.isfinite(loss)))
    assert bool(jnp.allclose(loss, ref, atol=2e-3, rtol=2e-3))

    # two-output path + reduction
    loss_sum, c_iou = ciou_loss(predict, target, wh_to_xy=True,
                                reduction="sum", return_c_iou=True)
    jax.block_until_ready((loss_sum, c_iou))
    assert c_iou.shape == (n_boxes,)
    assert bool(jnp.allclose(c_iou, 1.0 - ref, atol=2e-3, rtol=2e-3))
    assert bool(jnp.allclose(loss_sum, jnp.sum(ref), atol=1e-2, rtol=2e-3))

    print("KERNEL_OK")
</pallas_src>

<mosaic_0001>
module attributes {stable_mosaic.version = 11 : i64} {
  func.func @_ciou_kernel(%arg0: i32, %arg1: memref<4x8x128xf32, #tpu.memory_space<vmem>>, %arg2: memref<4x8x128xf32, #tpu.memory_space<vmem>>, %arg3: memref<8x128xf32, #tpu.memory_space<vmem>>) attributes {dimension_semantics = [#tpu.dimension_semantics<parallel>], iteration_bounds = array<i64: 1>, scalar_prefetch = 0 : i64, scratch_operands = 0 : i64, tpu.core_type = #tpu.core_type<tc>, window_params = [{transform_indices = @transform_0, window_bounds = array<i64: 4, 8, 128>}, {transform_indices = @transform_1, window_bounds = array<i64: 4, 8, 128>}, {transform_indices = @transform_2, window_bounds = array<i64: 8, 128>}]} {
    %c0 = arith.constant 0 : index
    %c0_0 = arith.constant 0 : index
    %c0_1 = arith.constant 0 : index
    %0 = vector.load %arg1[%c0, %c0_0, %c0_1] : memref<4x8x128xf32, #tpu.memory_space<vmem>>, vector<4x8x128xf32>
    %c0_2 = arith.constant 0 : index
    %c0_3 = arith.constant 0 : index
    %c0_4 = arith.constant 0 : index
    %1 = vector.load %arg2[%c0_2, %c0_3, %c0_4] : memref<4x8x128xf32, #tpu.memory_space<vmem>>, vector<4x8x128xf32>
    %2 = vector.extract_strided_slice %0 {offsets = [0, 0, 0], sizes = [1, 8, 128], strides = [1, 1, 1]} : vector<4x8x128xf32> to vector<1x8x128xf32>
    %3 = vector.shape_cast %2 : vector<1x8x128xf32> to vector<8x128xf32>
    %4 = vector.extract_strided_slice %0 {offsets = [1, 0, 0], sizes = [1, 8, 128], strides = [1, 1, 1]} : vector<4x8x128xf32> to vector<1x8x128xf32>
    %5 = vector.shape_cast %4 : vector<1x8x128xf32> to vector<8x128xf32>
    %6 = vector.extract_strided_slice %0 {offsets = [2, 0, 0], sizes = [1, 8, 128], strides = [1, 1, 1]} : vector<4x8x128xf32> to vector<1x8x128xf32>
    %7 = vector.shape_cast %6 : vector<1x8x128xf32> to vector<8x128xf32>
    %8 = vector.extract_strided_slice %0 {offsets = [3, 0, 0], sizes = [1, 8, 128], strides = [1, 1, 1]} : vector<4x8x128xf32> to vector<1x8x128xf32>
    %9 = vector.shape_cast %8 : vector<1x8x128xf32> to vector<8x128xf32>
    %cst = arith.constant 5.000000e-01 : f32
    %10 = vector.broadcast %cst : f32 to vector<8x128xf32>
    %11 = arith.mulf %10, %7 : vector<8x128xf32>
    %12 = arith.subf %3, %11 : vector<8x128xf32>
    %cst_5 = arith.constant 5.000000e-01 : f32
    %13 = vector.broadcast %cst_5 : f32 to vector<8x128xf32>
    %14 = arith.mulf %13, %9 : vector<8x128xf32>
    %15 = arith.subf %5, %14 : vector<8x128xf32>
    %cst_6 = arith.constant 5.000000e-01 : f32
    %16 = vector.broadcast %cst_6 : f32 to vector<8x128xf32>
    %17 = arith.mulf %16, %7 : vector<8x128xf32>
    %18 = arith.addf %3, %17 : vector<8x128xf32>
    %cst_7 = arith.constant 5.000000e-01 : f32
    %19 = vector.broadcast %cst_7 : f32 to vector<8x128xf32>
    %20 = arith.mulf %19, %9 : vector<8x128xf32>
    %21 = arith.addf %5, %20 : vector<8x128xf32>
    %22 = vector.extract_strided_slice %1 {offsets = [0, 0, 0], sizes = [1, 8, 128], strides = [1, 1, 1]} : vector<4x8x128xf32> to vector<1x8x128xf32>
    %23 = vector.shape_cast %22 : vector<1x8x128xf32> to vector<8x128xf32>
    %24 = vector.extract_strided_slice %1 {offsets = [1, 0, 0], sizes = [1, 8, 128], strides = [1, 1, 1]} : vector<4x8x128xf32> to vector<1x8x128xf32>
    %25 = vector.shape_cast %24 : vector<1x8x128xf32> to vector<8x128xf32>
    %26 = vector.extract_strided_slice %1 {offsets = [2, 0, 0], sizes = [1, 8, 128], strides = [1, 1, 1]} : vector<4x8x128xf32> to vector<1x8x128xf32>
    %27 = vector.shape_cast %26 : vector<1x8x128xf32> to vector<8x128xf32>
    %28 = vector.extract_strided_slice %1 {offsets = [3, 0, 0], sizes = [1, 8, 128], strides = [1, 1, 1]} : vector<4x8x128xf32> to vector<1x8x128xf32>
    %29 = vector.shape_cast %28 : vector<1x8x128xf32> to vector<8x128xf32>
    %cst_8 = arith.constant 5.000000e-01 : f32
    %30 = vector.broadcast %cst_8 : f32 to vector<8x128xf32>
    %31 = arith.mulf %30, %27 : vector<8x128xf32>
    %32 = arith.subf %23, %31 : vector<8x128xf32>
    %cst_9 = arith.constant 5.000000e-01 : f32
    %33 = vector.broadcast %cst_9 : f32 to vector<8x128xf32>
    %34 = arith.mulf %33, %29 : vector<8x128xf32>
    %35 = arith.subf %25, %34 : vector<8x128xf32>
    %cst_10 = arith.constant 5.000000e-01 : f32
    %36 = vector.broadcast %cst_10 : f32 to vector<8x128xf32>
    %37 = arith.mulf %36, %27 : vector<8x128xf32>
    %38 = arith.addf %23, %37 : vector<8x128xf32>
    %cst_11 = arith.constant 5.000000e-01 : f32
    %39 = vector.broadcast %cst_11 : f32 to vector<8x128xf32>
    %40 = arith.mulf %39, %29 : vector<8x128xf32>
    %41 = arith.addf %25, %40 : vector<8x128xf32>
    %42 = arith.maximumf %12, %32 : vector<8x128xf32>
    %43 = arith.maximumf %15, %35 : vector<8x128xf32>
    %44 = arith.minimumf %18, %38 : vector<8x128xf32>
    %45 = arith.minimumf %21, %41 : vector<8x128xf32>
    %46 = arith.subf %44, %42 : vector<8x128xf32>
    %cst_12 = arith.constant 0.000000e+00 : f32
    %47 = vector.broadcast %cst_12 : f32 to vector<8x128xf32>
    %48 = arith.maximumf %46, %47 : vector<8x128xf32>
    %49 = arith.subf %45, %43 : vector<8x128xf32>
    %cst_13 = arith.constant 0.000000e+00 : f32
    %50 = vector.broadcast %cst_13 : f32 to vector<8x128xf32>
    %51 = arith.maximumf %49, %50 : vector<8x128xf32>
    %52 = arith.mulf %48, %51 : vector<8x128xf32>
    %53 = arith.subf %18, %12 : vector<8x128xf32>
    %54 = arith.subf %21, %15 : vector<8x128xf32>
    %55 = arith.mulf %53, %54 : vector<8x128xf32>
    %56 = arith.subf %38, %32 : vector<8x128xf32>
    %57 = arith.subf %41, %35 : vector<8x128xf32>
    %58 = arith.mulf %56, %57 : vector<8x128xf32>
    %59 = arith.addf %55, %58 : vector<8x128xf32>
    %60 = arith.subf %59, %52 : vector<8x128xf32>
    %cst_14 = arith.constant 1.000000e-07 : f32
    %61 = vector.broadcast %cst_14 : f32 to vector<8x128xf32>
    %62 = arith.addf %60, %61 : vector<8x128xf32>
    %63 = tpu.reciprocal %62 {approx = true} : vector<8x128xf32> -> vector<8x128xf32>
    %64 = arith.mulf %62, %63 : vector<8x128xf32>
    %cst_15 = arith.constant 2.000000e+00 : f32
    %65 = vector.broadcast %cst_15 : f32 to vector<8x128xf32>
    %66 = arith.subf %65, %64 : vector<8x128xf32>
    %67 = arith.mulf %63, %66 : vector<8x128xf32>
    %68 = arith.mulf %52, %67 : vector<8x128xf32>
    %69 = arith.addf %18, %12 : vector<8x128xf32>
    %cst_16 = arith.constant 5.000000e-01 : f32
    %70 = vector.broadcast %cst_16 : f32 to vector<8x128xf32>
    %71 = arith.mulf %69, %70 : vector<8x128xf32>
    %72 = arith.addf %21, %15 : vector<8x128xf32>
    %cst_17 = arith.constant 5.000000e-01 : f32
    %73 = vector.broadcast %cst_17 : f32 to vector<8x128xf32>
    %74 = arith.mulf %72, %73 : vector<8x128xf32>
    %75 = arith.addf %38, %32 : vector<8x128xf32>
    %cst_18 = arith.constant 5.000000e-01 : f32
    %76 = vector.broadcast %cst_18 : f32 to vector<8x128xf32>
    %77 = arith.mulf %75, %76 : vector<8x128xf32>
    %78 = arith.addf %41, %35 : vector<8x128xf32>
    %cst_19 = arith.constant 5.000000e-01 : f32
    %79 = vector.broadcast %cst_19 : f32 to vector<8x128xf32>
    %80 = arith.mulf %78, %79 : vector<8x128xf32>
    %81 = arith.subf %77, %71 : vector<8x128xf32>
    %82 = arith.mulf %81, %81 : vector<8x128xf32>
    %83 = arith.subf %80, %74 : vector<8x128xf32>
    %84 = arith.mulf %83, %83 : vector<8x128xf32>
    %85 = arith.addf %82, %84 : vector<8x128xf32>
    %86 = arith.minimumf %12, %32 : vector<8x128xf32>
    %87 = arith.minimumf %15, %35 : vector<8x128xf32>
    %88 = arith.maximumf %18, %38 : vector<8x128xf32>
    %89 = arith.maximumf %21, %41 : vector<8x128xf32>
    %90 = arith.subf %86, %88 : vector<8x128xf32>
    %91 = arith.mulf %90, %90 : vector<8x128xf32>
    %92 = arith.subf %87, %89 : vector<8x128xf32>
    %93 = arith.mulf %92, %92 : vector<8x128xf32>
    %94 = arith.addf %91, %93 : vector<8x128xf32>
    %95 = tpu.reciprocal %94 {approx = true} : vector<8x128xf32> -> vector<8x128xf32>
    %96 = arith.mulf %94, %95 : vector<8x128xf32>
    %cst_20 = arith.constant 2.000000e+00 : f32
    %97 = vector.broadcast %cst_20 : f32 to vector<8x128xf32>
    %98 = arith.subf %97, %96 : vector<8x128xf32>
    %99 = arith.mulf %95, %98 : vector<8x128xf32>
    %100 = arith.mulf %85, %99 : vector<8x128xf32>
    %101 = arith.subf %68, %100 : vector<8x128xf32>
    %102 = arith.subf %38, %32 : vector<8x128xf32>
    %cst_21 = arith.constant 1.000000e+00 : f32
    %103 = vector.broadcast %cst_21 : f32 to vector<8x128xf32>
    %104 = arith.addf %102, %103 : vector<8x128xf32>
    %105 = arith.subf %41, %35 : vector<8x128xf32>
    %cst_22 = arith.constant 1.000000e+00 : f32
    %106 = vector.broadcast %cst_22 : f32 to vector<8x128xf32>
    %107 = arith.addf %105, %106 : vector<8x128xf32>
    %108 = arith.subf %18, %12 : vector<8x128xf32>
    %cst_23 = arith.constant 1.000000e+00 : f32
    %109 = vector.broadcast %cst_23 : f32 to vector<8x128xf32>
    %110 = arith.addf %108, %109 : vector<8x128xf32>
    %111 = arith.subf %21, %15 : vector<8x128xf32>
    %cst_24 = arith.constant 1.000000e+00 : f32
    %112 = vector.broadcast %cst_24 : f32 to vector<8x128xf32>
    %113 = arith.addf %111, %112 : vector<8x128xf32>
    %114 = arith.mulf %104, %113 : vector<8x128xf32>
    %115 = arith.mulf %110, %107 : vector<8x128xf32>
    %116 = arith.subf %114, %115 : vector<8x128xf32>
    %117 = arith.mulf %107, %113 : vector<8x128xf32>
    %118 = arith.mulf %104, %110 : vector<8x128xf32>
    %119 = arith.addf %117, %118 : vector<8x128xf32>
    %120 = tpu.reciprocal %119 {approx = true} : vector<8x128xf32> -> vector<8x128xf32>
    %121 = arith.mulf %119, %120 : vector<8x128xf32>
    %cst_25 = arith.constant 2.000000e+00 : f32
    %122 = vector.broadcast %cst_25 : f32 to vector<8x128xf32>
    %123 = arith.subf %122, %121 : vector<8x128xf32>
    %124 = arith.mulf %120, %123 : vector<8x128xf32>
    %125 = arith.mulf %116, %124 : vector<8x128xf32>
    %cst_26 = arith.constant 0.000000e+00 : f32
    %126 = vector.broadcast %cst_26 : f32 to vector<8x128xf32>
    %127 = arith.cmpf olt, %125, %126 : vector<8x128xf32>
    %cst_27 = arith.constant -1.000000e+00 : f32
    %cst_28 = arith.constant 1.000000e+00 : f32
    %128 = vector.broadcast %cst_27 : f32 to vector<8x128xf32>
    %129 = vector.broadcast %cst_28 : f32 to vector<8x128xf32>
    %130 = arith.select %127, %128, %129 : vector<8x128xi1>, vector<8x128xf32>
    %131 = math.absf %125 : vector<8x128xf32>
    %cst_29 = arith.constant 2.41421366 : f32
    %132 = vector.broadcast %cst_29 : f32 to vector<8x128xf32>
    %133 = arith.cmpf ogt, %131, %132 : vector<8x128xf32>
    %cst_30 = arith.constant 0.414213568 : f32
    %134 = vector.broadcast %cst_30 : f32 to vector<8x128xf32>
    %135 = arith.cmpf ogt, %131, %134 : vector<8x128xf32>
    %cst_31 = arith.constant 1.000000e-30 : f32
    %136 = vector.broadcast %cst_31 : f32 to vector<8x128xf32>
    %137 = arith.addf %131, %136 : vector<8x128xf32>
    %138 = tpu.reciprocal %137 {approx = true} : vector<8x128xf32> -> vector<8x128xf32>
    %139 = arith.mulf %137, %138 : vector<8x128xf32>
    %cst_32 = arith.constant 2.000000e+00 : f32
    %140 = vector.broadcast %cst_32 : f32 to vector<8x128xf32>
    %141 = arith.subf %140, %139 : vector<8x128xf32>
    %142 = arith.mulf %138, %141 : vector<8x128xf32>
    %cst_33 = arith.constant 0.000000e+00 : f32
    %143 = vector.broadcast %cst_33 : f32 to vector<8x128xf32>
    %144 = arith.subf %143, %142 : vector<8x128xf32>
    %cst_34 = arith.constant 1.000000e+00 : f32
    %145 = vector.broadcast %cst_34 : f32 to vector<8x128xf32>
    %146 = arith.subf %131, %145 : vector<8x128xf32>
    %cst_35 = arith.constant 1.000000e+00 : f32
    %147 = vector.broadcast %cst_35 : f32 to vector<8x128xf32>
    %148 = arith.addf %131, %147 : vector<8x128xf32>
    %149 = tpu.reciprocal %148 {approx = true} : vector<8x128xf32> -> vector<8x128xf32>
    %150 = arith.mulf %148, %149 : vector<8x128xf32>
    %cst_36 = arith.constant 2.000000e+00 : f32
    %151 = vector.broadcast %cst_36 : f32 to vector<8x128xf32>
    %152 = arith.subf %151, %150 : vector<8x128xf32>
    %153 = arith.mulf %149, %152 : vector<8x128xf32>
    %154 = arith.mulf %146, %153 : vector<8x128xf32>
    %155 = arith.select %135, %154, %131 : vector<8x128xi1>, vector<8x128xf32>
    %156 = arith.select %133, %144, %155 : vector<8x128xi1>, vector<8x128xf32>
    %cst_37 = arith.constant 0.785398185 : f32
    %cst_38 = arith.constant 0.000000e+00 : f32
    %157 = vector.broadcast %cst_37 : f32 to vector<8x128xf32>
    %158 = vector.broadcast %cst_38 : f32 to vector<8x128xf32>
    %159 = arith.select %135, %157, %158 : vector<8x128xi1>, vector<8x128xf32>
    %cst_39 = arith.constant 1.57079637 : f32
    %160 = vector.broadcast %cst_39 : f32 to vector<8x128xf32>
    %161 = arith.select %133, %160, %159 : vector<8x128xi1>, vector<8x128xf32>
    %162 = arith.mulf %156, %156 : vector<8x128xf32>
    %cst_40 = arith.constant 0.0805374458 : f32
    %163 = vector.broadcast %cst_40 : f32 to vector<8x128xf32>
    %164 = arith.mulf %163, %162 : vector<8x128xf32>
    %cst_41 = arith.constant 0.138776854 : f32
    %165 = vector.broadcast %cst_41 : f32 to vector<8x128xf32>
    %166 = arith.subf %164, %165 : vector<8x128xf32>
    %167 = arith.mulf %166, %162 : vector<8x128xf32>
    %cst_42 = arith.constant 0.199777111 : f32
    %168 = vector.broadcast %cst_42 : f32 to vector<8x128xf32>
    %169 = arith.addf %167, %168 : vector<8x128xf32>
    %170 = arith.mulf %169, %162 : vector<8x128xf32>
    %cst_43 = arith.constant 0.333329499 : f32
    %171 = vector.broadcast %cst_43 : f32 to vector<8x128xf32>
    %172 = arith.subf %170, %171 : vector<8x128xf32>
    %173 = arith.addf %161, %156 : vector<8x128xf32>
    %174 = arith.mulf %156, %162 : vector<8x128xf32>
    %175 = arith.mulf %174, %172 : vector<8x128xf32>
    %176 = arith.addf %173, %175 : vector<8x128xf32>
    %177 = arith.mulf %130, %176 : vector<8x128xf32>
    %178 = arith.mulf %177, %177 : vector<8x128xf32>
    %cst_44 = arith.constant 0.405284733 : f32
    %179 = vector.broadcast %cst_44 : f32 to vector<8x128xf32>
    %180 = arith.mulf %178, %179 : vector<8x128xf32>
    %cst_45 = arith.constant 1.000000e+00 : f32
    %181 = vector.broadcast %cst_45 : f32 to vector<8x128xf32>
    %182 = arith.subf %181, %68 : vector<8x128xf32>
    %183 = arith.addf %182, %180 : vector<8x128xf32>
    %184 = tpu.reciprocal %183 {approx = true} : vector<8x128xf32> -> vector<8x128xf32>
    %185 = arith.mulf %183, %184 : vector<8x128xf32>
    %cst_46 = arith.constant 2.000000e+00 : f32
    %186 = vector.broadcast %cst_46 : f32 to vector<8x128xf32>
    %187 = arith.subf %186, %185 : vector<8x128xf32>
    %188 = arith.mulf %184, %187 : vector<8x128xf32>
    %189 = arith.mulf %180, %188 : vector<8x128xf32>
    %190 = arith.mulf %189, %180 : vector<8x128xf32>
    %191 = arith.subf %101, %190 : vector<8x128xf32>
    %cst_47 = arith.constant -1.000000e+00 : f32
    %cst_48 = arith.constant 1.000000e+00 : f32
    %192 = vector.broadcast %cst_47 : f32 to vector<8x128xf32>
    %193 = arith.maximumf %192, %191 : vector<8x128xf32>
    %194 = vector.broadcast %cst_48 : f32 to vector<8x128xf32>
    %195 = arith.minimumf %194, %193 : vector<8x128xf32>
    %cst_49 = arith.constant 1.000000e+00 : f32
    %196 = vector.broadcast %cst_49 : f32 to vector<8x128xf32>
    %197 = arith.subf %196, %195 : vector<8x128xf32>
    %c0_50 = arith.constant 0 : index
    %c0_51 = arith.constant 0 : index
    %198 = vector.load %arg3[%c0_50, %c0_51] : memref<8x128xf32, #tpu.memory_space<vmem>>, vector<8x128xf32>
    tpu.vector_store %arg3[%c0_50, %c0_51], %197 {strides = array<i32>} : memref<8x128xf32, #tpu.memory_space<vmem>>, vector<8x128xf32>,
    return
  }
  func.func @transform_0(%arg0: i32) -> (i32, i32, i32) {
    %c0_i32 = arith.constant 0 : i32
    %c0_i32_0 = arith.constant 0 : i32
    %c0_i32_1 = arith.constant 0 : i32
    return %c0_i32, %arg0, %c0_i32_0 : i32, i32, i32
  }
  func.func @transform_1(%arg0: i32) -> (i32, i32, i32) {
    %c0_i32 = arith.constant 0 : i32
    %c0_i32_0 = arith.constant 0 : i32
    %c0_i32_1 = arith.constant 0 : i32
    return %c0_i32, %arg0, %c0_i32_0 : i32, i32, i32
  }
  func.func @transform_2(%arg0: i32) -> (i32, i32) {
    %c0_i32 = arith.constant 0 : i32
    %c0_i32_0 = arith.constant 0 : i32
    return %arg0, %c0_i32 : i32, i32
  }
}

</mosaic_0001>

<bundles_post_ra>
// kernel: tpu_custom_call.1
= control target key start
LH: loop header
LB: loop body
LE: loop exit
PB: predicated region body
PF: predicated region fallthrough
CT: control target
= control target key end

     0   :  { %7 = vsyncpa [#allocation3], 0  ;;  %s347_s0 = inlined_call_operand.hbm [shape: f32[4,8,128], index: 0, kind: input, shape index: {}]   ;;  %s348_s1 = inlined_call_operand.hbm [shape: f32[4,8,128], index: 1, kind: input, shape index: {}]   ;;  %s349_s2 = inlined_call_operand.hbm [shape: f32[8,128], index: 2, kind: output, shape index: {}]  }
   0x1   :  { %8 = vsyncpa [#allocation6], 0 }
   0x2   :  { %9 = vsyncpa [#allocation4], 0  ;;  %s286_s9 = smov [#allocation2]   ;;  %s214_s13 = scalar_lea.hbm %s347_s0, 512 }
   0x3   :  { %s15_s10 = sshll.u32 %s286_s9, 4  ;;  %p215_p0 = scmp.ne.s32.totalorder %s347_s0, %s214_s13  ;;  %s16_s10 = int_to_ptr.vmem [resolvable:$true] %s15_s10 }
   0x4   :  { %p218_p1 = scmp.lt.u32.totalorder %s214_s13, %s347_s0 }
   0x6   :  { %p220_p2 = pnand %p218_p1, %p215_p0 }
   0x8   :  { %223 = shalt.err (!%p220_p2)
}
   0x9   :  { %s224_s18 = scalar_lea.vmem %s16_s10, 512  ;;  %p229_p4 = scmp.lt.s32.totalorder %s16_s10, %s16_s10 }
   0xa   :  { %p225_p3 = scmp.ne.s32.totalorder %s16_s10, %s224_s18  ;;  %p230_p5 = scmp.lt.s32.totalorder %s224_s18, %s224_s18 }
   0xc   :  { %p231_p6 = por %p230_p5, %p229_p4 }
   0xe   :  { %p232_p7 = pnand %p231_p6, %p225_p3 }
  0x10   :  { %235 = shalt.err (!%p232_p7)
}
  0x11   :  { %s287_s19 = smov 128   ;;  %s288_s20 = smov 8  }
  0x12   :  { %21 = dma.hbm_to_vmem [thread:$0]  %s347_s0, 512, %s16_s10, [#allocation3], %s287_s19, %s287_s19, %s288_s20  }
  0x13   :  { %s289_s23 = smov [#allocation5]   ;;  %s236_s27 = scalar_lea.hbm %s348_s1, 512 }
  0x14   :  { %s27_s24 = sshll.u32 %s289_s23, 4  ;;  %p237_p8 = scmp.ne.s32.totalorder %s348_s1, %s236_s27  ;;  %s28_s24 = int_to_ptr.vmem [resolvable:$true] %s27_s24 }
  0x15   :  { %p240_p9 = scmp.lt.u32.totalorder %s236_s27, %s348_s1 }
  0x17   :  { %p242_p10 = pnand %p240_p9, %p237_p8 }
  0x19   :  { %245 = shalt.err (!%p242_p10)
}
  0x1a   :  { %s246_s4 = scalar_lea.vmem %s28_s24, 512  ;;  %p251_p12 = scmp.lt.s32.totalorder %s28_s24, %s28_s24 }
  0x1b   :  { %p247_p11 = scmp.ne.s32.totalorder %s28_s24, %s246_s4  ;;  %p252_p13 = scmp.lt.s32.totalorder %s246_s4, %s246_s4 }
  0x1d   :  { %p253_p0 = por %p252_p13, %p251_p12 }
  0x1f   :  { %p254_p1 = pnand %p253_p0, %p247_p11 }
  0x21   :  { %257 = shalt.err (!%p254_p1)
}
  0x22   :  { %33 = dma.hbm_to_vmem [thread:$0]  %s348_s1, 512, %s28_s24, [#allocation6], %s287_s19, %s287_s19, %s288_s20  }
  0x23   :  { %280 = dma.done.wait [#allocation3], 512  }
  0x24   :  { %281 = vsyncadd [#allocation3], 4294966784 }
  0x25   :  { %282 = dma.done.wait [#allocation6], 512  }
  0x26   :  { %283 = vsyncadd [#allocation6], 4294966784  ;;  %v40_v0 = vld [vmem:[#allocation2] sm:$0xff]  ;;  %v42_v1 = vld [vmem:[#allocation2 + $0x10] sm:$0xff]  ;;  %s292_s1 = smov [#allocation7]  }
  0x27   :  { %v41_v2 = vld [vmem:[#allocation2 + $0x8] sm:$0xff]  ;;  %v43_v3 = vld [vmem:[#allocation2 + $0x18] sm:$0xff]  ;;  %v44_v4 = vld [vmem:[#allocation5] sm:$0xff]  ;;  %v48_v5 = vmul.f32 0.5, %v42_v1  ;;  %s181_s6 = sshll.u32 %s292_s1, 4  ;;  %s182_s6 = int_to_ptr.vmem [resolvable:$true] %s181_s6 }
  0x28   :  { %v45_v6 = vld [vmem:[#allocation5 + $0x8] sm:$0xff]  ;;  %v46_v7 = vld [vmem:[#allocation5 + $0x10] sm:$0xff]  ;;  %v47_v8 = vld [vmem:[#allocation5 + $0x18] sm:$0xff]  ;;  %v50_v9 = vmul.f32 0.5, %v43_v3  ;;  %s258_s7 = scalar_lea.vmem %s182_s6, 128  ;;  %p263_p3 = scmp.lt.s32.totalorder %s182_s6, %s182_s6 }
  0x29   :  { %v54_v10 = vmul.f32 0.5, %v46_v7  ;;  %v56_v11 = vmul.f32 0.5, %v47_v8  ;;  %v49_v12 = vsub.f32 %v40_v0, %v48_v5  ;;  %v52_v14 = vadd.f32 %v48_v5, %v40_v0  ;;  %p259_p2 = scmp.ne.s32.totalorder %s182_s6, %s258_s7  ;;  %p264_p4 = scmp.lt.s32.totalorder %s258_s7, %s258_s7 }
  0x2a   :  { %v51_v13 = vsub.f32 %v41_v2, %v50_v9  ;;  %v53_v15 = vadd.f32 %v50_v9, %v41_v2 }
  0x2b   :  { %v55_v16 = vsub.f32 %v44_v4, %v54_v10  ;;  %v57_v17 = vsub.f32 %v45_v6, %v56_v11  ;;  %v58_v18 = vadd.f32 %v54_v10, %v44_v4  ;;  %v59_v19 = vadd.f32 %v56_v11, %v45_v6  ;;  %p265_p5 = por %p264_p4, %p263_p3 }
  0x2c   :  { %v83_v20 = vadd.f32 %v52_v14, %v49_v12  ;;  %v85_v21 = vadd.f32 %v53_v15, %v51_v13  ;;  %v69_v22 = vsub.f32 %v52_v14, %v49_v12  ;;  %v70_v23 = vsub.f32 %v53_v15, %v51_v13 }
  0x2d   :  { %v72_v24 = vsub.f32 %v58_v18, %v55_v16  ;;  %v73_v25 = vsub.f32 %v59_v19, %v57_v17  ;;  %v87_v27 = vadd.f32 %v58_v18, %v55_v16  ;;  %v89_v29 = vadd.f32 %v59_v19, %v57_v17  ;;  %p266_p6 = pnand %p265_p5, %p259_p2 }
  0x2e   :  { %v84_v26 = vmul.f32 0.5, %v83_v20  ;;  %v86_v28 = vmul.f32 0.5, %v85_v21  ;;  %v96_v30 = vmin.f32 %v49_v12, %v55_v16  ;;  %v97_v31 = vmin.f32 %v51_v13, %v57_v17 }
  0x2f   :  { %v88_v32 = vmul.f32 0.5, %v87_v27  ;;  %v98_v33 = vmax.f32 %v52_v14, %v58_v18  ;;  %v90_v34 = vmul.f32 0.5, %v89_v29  ;;  %v99_v35 = vmax.f32 %v53_v15, %v59_v19 }
  0x30   :  { %v111_v38 = vadd.f32 1.0, %v72_v24  ;;  %v112_v39 = vadd.f32 1.0, %v73_v25  ;;  %v113_v42 = vadd.f32 1.0, %v69_v22  ;;  %v114_v43 = vadd.f32 1.0, %v70_v23 }
  0x31   :  { %v91_v36 = vsub.f32 %v88_v32, %v84_v26  ;;  %v100_v37 = vsub.f32 %v96_v30, %v98_v33  ;;  %v93_v40 = vsub.f32 %v90_v34, %v86_v28  ;;  %v102_v41 = vsub.f32 %v97_v31, %v99_v35 }
  0x32   :  { %v118_v48 = vmul.f32 %v114_v43, %v112_v39  ;;  %v119_v49 = vmul.f32 %v113_v42, %v111_v38  ;;  %v115_v54 = vmul.f32 %v114_v43, %v111_v38  ;;  %v116_v55 = vmul.f32 %v113_v42, %v112_v39 }
  0x33   :  { %v92_v44 = vmul.f32 %v91_v36, %v91_v36  ;;  %v101_v45 = vmul.f32 %v100_v37, %v100_v37  ;;  %v94_v46 = vmul.f32 %v93_v40, %v93_v40  ;;  %v103_v47 = vmul.f32 %v102_v41, %v102_v41 }
  0x34   :  { %v120_v52 = vadd.f32 %v119_v49, %v118_v48  ;;  %v60_v58 = vmax.f32 %v49_v12, %v55_v16  ;;  %v61_v60 = vmax.f32 %v51_v13, %v57_v17  ;;  %v62_v61 = vmin.f32 %v52_v14, %v58_v18 }
  0x35   :  { %v95_v50 = vadd.f32 %v94_v46, %v92_v44  ;;  %v104_v51 = vadd.f32 %v103_v47, %v101_v45  ;;  %v63_v62 = vmin.f32 %v53_v15, %v59_v19  ;;  %v117_v0 = vsub.f32 %v115_v54, %v116_v55 }
  0x36   :  { %v64_v4 = vsub.f32 %v62_v61, %v60_v58  ;;  %v71_v11 = vmul.f32 %v70_v23, %v69_v22  ;;  %v74_v20 = vmul.f32 %v73_v25, %v72_v24  ;;  %v290_v37 = vmov 0.0  }
  0x37   :  { %202 = vrcp.f32 %v104_v51  ;;  %v66_v5 = vsub.f32 %v63_v62, %v61_v60  ;;  %v291_v49 = vmov 1.0  }
  0x38   :  { %204 = vrcp.f32 %v120_v52  ;;  %v65_v9 = vmax.f32 %v64_v4, 0.0  ;;  %v75_v14 = vadd.f32 %v74_v20, %v71_v11 }
  0x39   :  { %v67_v10 = vmax.f32 %v66_v5, 0.0 }
  0x3b   :  { %v68_v13 = vmul.f32 %v67_v10, %v65_v9 }
  0x3d   :  { %v76_v15 = vsub.f32 %v75_v14, %v68_v13 }
  0x3f   :  { %v77_v17 = vadd.f32 1e-07, %v76_v15 }
  0x41   :  { %v203_v53 = vpop.eup %202 }
  0x42   :  { %v205_v56 = vpop.eup %204  ;;  %v106_v57 = vmul.f32 %v203_v53, %v104_v51 }
  0x43   :  { %v122_v59 = vmul.f32 %v205_v56, %v120_v52 }
  0x44   :  { %v107_v63 = vsub.f32 2.0, %v106_v57 }
  0x45   :  { %v123_v1 = vsub.f32 2.0, %v122_v59 }
  0x46   :  { %v108_v2 = vmul.f32 %v203_v53, %v107_v63 }
  0x47   :  { %v124_v3 = vmul.f32 %v205_v56, %v123_v1 }
  0x48   :  { %v332_v6 = vmul.f32 %v108_v2, %v95_v50 }
  0x49   :  { %v125_v7 = vmul.f32 %v124_v3, %v117_v0 }
  0x4b   :  { %v128_v8 = vand.u32 2147483647, %v125_v7  ;;  %vm126_vm2 = vcmp.lt.f32.partialorder %v125_v7, 0.0 }
  0x4c   :  { %v127_v50 = vsel %vm126_vm2, -1.0, %v291_v49 }
  0x4d   :  { %v131_v12 = vadd.f32 1e-30, %v128_v8  ;;  %v138_v16 = vadd.f32 1.0, %v128_v8  ;;  %v191_v28 = vadd.f32 -1.0, %v128_v8  ;;  %vm130_vm0 = vcmp.gt.f32.partialorder %v128_v8, 0.41421357 }
  0x4e   :  { %vm129_vm1 = vcmp.gt.f32.partialorder %v128_v8, 2.4142137  ;;  %v146_v38 = vsel %vm130_vm0, 0.7853982, %v290_v37 }
  0x4f   :  { %206 = vrcp.f32 %v131_v12  ;;  %v147_v42 = vsel %vm129_vm1, 1.5707964, %v146_v38 }
  0x50   :  { %208 = vrcp.f32 %v138_v16 }
  0x51   :  { %210 = vrcp.f32 %v77_v17 }
  0x59   :  { %v207_v18 = vpop.eup %206 }
  0x5a   :  { %v209_v19 = vpop.eup %208  ;;  %v133_v21 = vmul.f32 %v207_v18, %v131_v12 }
  0x5b   :  { %v140_v26 = vmul.f32 %v209_v19, %v138_v16  ;;  %v211_v33 = vpop.eup %210 }
  0x5c   :  { %v134_v27 = vsub.f32 2.0, %v133_v21  ;;  %v79_v35 = vmul.f32 %v211_v33, %v77_v17 }
  0x5d   :  { %v141_v29 = vsub.f32 2.0, %v140_v26 }
  0x5e   :  { %v135_v30 = vmul.f32 %v207_v18, %v134_v27  ;;  %v80_v40 = vsub.f32 2.0, %v79_v35 }
  0x5f   :  { %v142_v31 = vmul.f32 %v209_v19, %v141_v29 }
  0x60   :  { %v136_v22 = vsub.f32 0.0, %v135_v30  ;;  %v81_v45 = vmul.f32 %v211_v33, %v80_v40 }
  0x61   :  { %v143_v23 = vmul.f32 %v191_v28, %v142_v31 }
  0x62   :  { %v82_v51 = vmul.f32 %v81_v45, %v68_v13 }
  0x63   :  { %v144_v24 = vsel %vm130_vm0, %v143_v23, %v128_v8 }
  0x64   :  { %v145_v25 = vsel %vm129_vm1, %v136_v22, %v144_v24  ;;  %v162_v55 = vsub.f32 1.0, %v82_v51  ;;  %v110_v62 = vsub.f32 %v82_v51, %v332_v6 }
  0x65   :  { %v148_v32 = vmul.f32 %v145_v25, %v145_v25  ;;  %v155_v47 = vadd.f32 %v147_v42, %v145_v25 }
  0x67   :  { %v149_v34 = vmul.f32 0.080537446, %v148_v32  ;;  %v156_v44 = vmul.f32 %v148_v32, %v145_v25 }
  0x69   :  { %v192_v36 = vadd.f32 -0.13877685, %v149_v34 }
  0x6b   :  { %v151_v39 = vmul.f32 %v192_v36, %v148_v32 }
  0x6d   :  { %v152_v41 = vadd.f32 0.19977711, %v151_v39 }
  0x6f   :  { %v153_v43 = vmul.f32 %v152_v41, %v148_v32 }
  0x71   :  { %v193_v46 = vadd.f32 -0.3333295, %v153_v43 }
  0x73   :  { %v157_v48 = vmul.f32 %v193_v46, %v156_v44 }
  0x75   :  { %v158_v52 = vadd.f32 %v157_v48, %v155_v47 }
  0x77   :  { %v159_v53 = vmul.f32 %v158_v52, %v127_v50 }
  0x79   :  { %v160_v54 = vmul.f32 %v159_v53, %v159_v53 }
  0x7b   :  { %v161_v56 = vmul.f32 0.40528473, %v160_v54 }
  0x7d   :  { %v163_v57 = vadd.f32 %v162_v55, %v161_v56 }
  0x7f   :  { %212 = vrcp.f32 %v163_v57 }
  0x89   :  { %v213_v58 = vpop.eup %212 }
  0x8a   :  { %v165_v59 = vmul.f32 %v213_v58, %v163_v57 }
  0x8c   :  { %v166_v60 = vsub.f32 2.0, %v165_v59 }
  0x8e   :  { %v167_v61 = vmul.f32 %v213_v58, %v166_v60 }
  0x90   :  { %v168_v63 = vmul.f32 %v167_v61, %v161_v56 }
  0x92   :  { %v169_v0 = vmul.f32 %v168_v63, %v161_v56 }
  0x94   :  { %v170_v1 = vsub.f32 %v110_v62, %v169_v0 }
  0x96   :  { %v194_v2 = vclamps-f32 %v170_v1, 1.0 }
  0x98   :  { %v173_v3 = vsub.f32 1.0, %v194_v2 }
  0x9a   :  { %174 = vst [vmem:[#allocation7] sm:$0xff] %v173_v3 }
  0x9b   :  { %269 = shalt.err (!%p266_p6)
}
  0x9c   :  { %s270_s10 = scalar_lea.hbm %s349_s2, 128 }
  0x9d   :  { %p271_p7 = scmp.ne.s32.totalorder %s349_s2, %s270_s10  ;;  %p274_p8 = scmp.lt.u32.totalorder %s270_s10, %s349_s2 }
  0x9f   :  { %p276_p9 = pnand %p274_p8, %p271_p7 }
  0xa1   :  { %279 = shalt.err (!%p276_p9)
}
  0xa2   :  { %184 = dma.vmem_to_hbm [thread:$0]  %s182_s6, 128, %s349_s2, [#allocation4]  }
  0xa3   :  { %284 = dma.done.wait [#allocation4], 128  }
  0xa4   :  { %285 = vsyncadd [#allocation4], 4294967168 }
  0xa5   :  { %188 = vsyncpa [#allocation3], 1 }
  0xa6   :  { %189 = vsyncpa [#allocation6], 1 }
  0xa7   :  { %190 = vsyncpa [#allocation4], 1 }

</bundles_post_ra>
